<compile_context>
chip_gen: v7x
topology: tpu7x:2x2x1
jax: 0.10.0
libtpu: 0.0.40
codegen_flags: <defaults>
</compile_context>

<pallas_src>
import functools

import jax
import jax.numpy as jnp
from jax.experimental import pallas as pl
from jax.experimental.pallas import tpu as pltpu

BN_EPS = 1e-5


def _round_up(x, m):
    return (x + m - 1) // m * m


def _pick_tile(dim_pad, target):
    """Largest multiple of 128 that divides dim_pad and is <= max(target, 128)."""
    t = max(128, min(target, dim_pad))
    t = (t // 128) * 128
    while t > 128 and dim_pad % t != 0:
        t -= 128
    return t


def _vmem_bytes(n, k_pad, tn, tk, x_resident):
    x_b = 2 * n * (k_pad if x_resident else tk) * 2   # bf16 (conservatively 2 bufs)
    w_b = 2 * tk * tn * 2                             # bf16 W tiles, double-buffered
    o_b = 2 * n * tn * 4                              # f32 output tiles (= accumulator)
    p_b = 3 * 2 * tn * 4                              # bias / gamma / beta tiles
    return x_b + w_b + o_b + p_b


def _fc_bn_relu_kernel(x_ref, w_ref, b_ref, g_ref, be_ref, o_ref,
                       *, n_rows, with_bn, x_resident):
    k = pl.program_id(1)

    @pl.when(k == 0)
    def _():
        o_ref[...] = jnp.zeros(o_ref.shape, o_ref.dtype)

    # x chunk: resident -> dynamic leading-axis index; streamed -> whole tile.
    x_blk = x_ref[k] if x_resident else x_ref[0]

    # MXU: bf16 x bf16, f32 accumulation directly into the resident output block.
    o_ref[...] += jnp.dot(x_blk, w_ref[...], preferred_element_type=jnp.float32)

    @pl.when(k == pl.num_programs(1) - 1)
    def _():
        y = o_ref[...] + b_ref[...]                       # (N, TN) f32
        if with_bn:
            # Two-pass batch stats (biased, PyTorch training-mode BN); cheap
            # since y is already resident in VMEM.
            inv_n = 1.0 / n_rows
            mean = jnp.sum(y, axis=0, keepdims=True) * inv_n
            d = y - mean
            var = jnp.sum(d * d, axis=0, keepdims=True) * inv_n
            y = g_ref[...] * (d * jax.lax.rsqrt(var + BN_EPS)) + be_ref[...]
        o_ref[...] = jnp.maximum(y, 0.0).astype(o_ref.dtype)


def fully_connected_forward(x, w_t, b, gamma, beta, *, with_bn=True,
                            tn_target=512, tk_target=512):
    """x: (N, inp_dim) f32; w_t: (inp_dim, out_dim); b/gamma/beta: (1, out_dim)."""
    n, k_dim = x.shape
    k_w, out_dim = w_t.shape
    assert k_w == k_dim

    k_pad = _round_up(k_dim, 128)
    o_pad = _round_up(out_dim, 128)

    # --- per-generation VMEM budget ------------------------------------
    try:
        vmem_cap = int(getattr(pltpu.get_tpu_info(), "vmem_capacity_bytes",
                               64 << 20))
    except Exception:
        vmem_cap = 64 << 20
    budget = max(vmem_cap - (16 << 20), 24 << 20)   # headroom for compiler scratch

    # --- tile selection --------------------------------------------------
    tn = _pick_tile(o_pad, tn_target)
    # v7x megacore: keep at least two feature tiles so both TCs get work.
    if o_pad // tn < 2 and o_pad >= 256:
        tn = _pick_tile(o_pad, o_pad // 2)
    tk = _pick_tile(k_pad, tk_target)

    # Keep x fully VMEM-resident (read from HBM exactly once) when it pays off
    # and fits; otherwise stream (1, N, tk) tiles, shrinking tiles to fit.
    x_resident = (o_pad // tn >= 2) and (_vmem_bytes(n, k_pad, tn, tk, True) <= budget)
    if not x_resident:
        while (_vmem_bytes(n, k_pad, tn, tk, False) > budget
               and (tn > 128 or tk > 128)):
            if tn > 128:
                tn = _pick_tile(o_pad, tn - 128)
            elif tk > 128:
                tk = _pick_tile(k_pad, tk - 128)

    kc = k_pad // tk
    grid = (o_pad // tn, kc)

    # --- operand prep ----------------------------------------------------
    # Batch axis is NEVER padded so BN statistics stay exact.  The K-chunk
    # layout (kc, N, tk) fuses with the mandatory f32->bf16 cast under jit,
    # so it costs no extra HBM pass.
    x_p = x if k_pad == k_dim else jnp.pad(x, ((0, 0), (0, k_pad - k_dim)))
    x_p3 = x_p.astype(jnp.bfloat16).reshape(n, kc, tk).transpose(1, 0, 2)

    if (k_pad, o_pad) == (k_dim, out_dim):
        w_p = w_t
    else:
        w_p = jnp.pad(w_t, ((0, k_pad - k_dim), (0, o_pad - out_dim)))
    w_p = w_p.astype(jnp.bfloat16)

    def _prep_vec(v):
        v = v if o_pad == out_dim else jnp.pad(v, ((0, 0), (0, o_pad - out_dim)))
        return v.astype(jnp.float32)

    b_p, g_p, be_p = _prep_vec(b), _prep_vec(gamma), _prep_vec(beta)

    if x_resident:
        x_spec = pl.BlockSpec((kc, n, tk), lambda j, k: (0, 0, 0))
        x_hbm_reads = 1
    else:
        x_spec = pl.BlockSpec((1, n, tk), lambda j, k: (k, 0, 0))
        x_hbm_reads = grid[0]

    vmem_need = _vmem_bytes(n, k_pad, tn, tk, x_resident)
    vmem_limit = int(min(vmem_cap, max(vmem_need + (8 << 20), 32 << 20)))

    cost = pl.CostEstimate(
        flops=2 * n * k_pad * o_pad + 10 * n * o_pad,
        transcendentals=o_pad,
        bytes_accessed=(n * k_pad * 2 * x_hbm_reads       # x (bf16)
                        + k_pad * o_pad * 2                # W (bf16)
                        + 3 * o_pad * 4                    # bias/gamma/beta
                        + n * o_pad * 4),                  # output (f32)
    )

    kernel = functools.partial(_fc_bn_relu_kernel, n_rows=n, with_bn=with_bn,
                               x_resident=x_resident)

    out_padded = pl.pallas_call(
        kernel,
        out_shape=jax.ShapeDtypeStruct((n, o_pad), jnp.float32),
        grid_spec=pltpu.PrefetchScalarGridSpec(
            num_scalar_prefetch=0,
            grid=grid,
            in_specs=[
                x_spec,                                       # x (kc, N, tk)
                pl.BlockSpec((tk, tn), lambda j, k: (k, j)),  # W
                pl.BlockSpec((1, tn), lambda j, k: (0, j)),   # bias
                pl.BlockSpec((1, tn), lambda j, k: (0, j)),   # gamma
                pl.BlockSpec((1, tn), lambda j, k: (0, j)),   # beta
            ],
            out_specs=pl.BlockSpec((n, tn), lambda j, k: (0, j)),
        ),
        compiler_params=pltpu.CompilerParams(
            dimension_semantics=("parallel", "arbitrary"),
            vmem_limit_bytes=vmem_limit,
        ),
        cost_estimate=cost,
    )(x_p3, w_p, b_p, g_p, be_p)

    return out_padded[:, :out_dim] if o_pad != out_dim else out_padded


def init_params(key, inp_dim, out_dim):
    """nn.Linear-style uniform fan-in init; BN gamma=1, beta=0 (PyTorch defaults)."""
    kw, kb = jax.random.split(key)
    bound = 1.0 / (inp_dim ** 0.5)
    w = jax.random.uniform(kw, (out_dim, inp_dim), jnp.float32, -bound, bound)
    b = jax.random.uniform(kb, (out_dim,), jnp.float32, -bound, bound)
    gamma = jnp.ones((out_dim,), jnp.float32)
    beta = jnp.zeros((out_dim,), jnp.float32)
    return w.T, b.reshape(1, out_dim), gamma.reshape(1, out_dim), beta.reshape(1, out_dim)


def _reference(x, w_t, b, gamma, beta, with_bn):
    # Matches the kernel's bf16 MXU inputs with f32 accumulation.
    xb = x.astype(jnp.bfloat16).astype(jnp.float32)
    wb = w_t.astype(jnp.bfloat16).astype(jnp.float32)
    y = xb @ wb + b
    if with_bn:
        mean = jnp.mean(y, axis=0, keepdims=True)
        var = jnp.mean((y - mean) ** 2, axis=0, keepdims=True)
        y = gamma * (y - mean) / jnp.sqrt(var + BN_EPS) + beta
    return jnp.maximum(y, 0.0)


if __name__ == "__main__":
    key = jax.random.PRNGKey(0)
    k_x1, k_p1, k_x2, k_p2 = jax.random.split(key, 4)

    # ---- Test 1: small shape (streamed-x path), with and without BN ----
    batch, inp_dim, out_dim = 8, 32, 16
    x = jax.random.normal(k_x1, (batch, inp_dim), jnp.float32)
    w_t, b, gamma, beta = init_params(k_p1, inp_dim, out_dim)

    fwd_bn = jax.jit(functools.partial(fully_connected_forward, with_bn=True))
    out = jax.block_until_ready(fwd_bn(x, w_t, b, gamma, beta))
    assert out.shape == (batch, out_dim)
    ref = _reference(x, w_t, b, gamma, beta, with_bn=True)
    assert jnp.max(jnp.abs(out - ref)) < 2e-3

    fwd_nobn = jax.jit(functools.partial(fully_connected_forward, with_bn=False))
    out_nb = jax.block_until_ready(fwd_nobn(x, w_t, b, gamma, beta))
    ref_nb = _reference(x, w_t, b, gamma, beta, with_bn=False)
    assert jnp.max(jnp.abs(out_nb - ref_nb)) < 2e-3

    # Loose check against a full-precision f32 forward.
    y32 = x @ w_t + b
    m32 = jnp.mean(y32, axis=0, keepdims=True)
    v32 = jnp.mean((y32 - m32) ** 2, axis=0, keepdims=True)
    ref32 = jnp.maximum(gamma * (y32 - m32) / jnp.sqrt(v32 + BN_EPS) + beta, 0.0)
    assert jnp.max(jnp.abs(out - ref32)) < 5e-2

    # ---- Test 2: exercise resident-x path, K accumulation, grid[0] >= 2 ----
    batch2, inp2, out2 = 8, 256, 256
    x2 = jax.random.normal(k_x2, (batch2, inp2), jnp.float32)
    w_t2, b2, gamma2, beta2 = init_params(k_p2, inp2, out2)
    fwd2 = jax.jit(functools.partial(fully_connected_forward, with_bn=True,
                                     tn_target=128, tk_target=128))
    out2_arr = jax.block_until_ready(fwd2(x2, w_t2, b2, gamma2, beta2))
    assert out2_arr.shape == (batch2, out2)
    ref2 = _reference(x2, w_t2, b2, gamma2, beta2, with_bn=True)
    assert jnp.max(jnp.abs(out2_arr - ref2)) < 2e-3

    print("KERNEL_OK")
</pallas_src>

<mosaic_0001>
module attributes {stable_mosaic.version = 11 : i64} {
  func.func @_fc_bn_relu_kernel(%arg0: i32, %arg1: i32, %arg2: memref<1x8x128xbf16, #tpu.memory_space<vmem>>, %arg3: memref<128x128xbf16, #tpu.memory_space<vmem>>, %arg4: memref<1x128xf32, #tpu.memory_space<vmem>>, %arg5: memref<1x128xf32, #tpu.memory_space<vmem>>, %arg6: memref<1x128xf32, #tpu.memory_space<vmem>>, %arg7: memref<8x128xf32, #tpu.memory_space<vmem>>) attributes {dimension_semantics = [#tpu.dimension_semantics<parallel>, #tpu.dimension_semantics<arbitrary>], iteration_bounds = array<i64: 1, 1>, scalar_prefetch = 0 : i64, scratch_operands = 0 : i64, tpu.core_type = #tpu.core_type<tc>, window_params = [{transform_indices = @transform_0, window_bounds = array<i64: 1, 8, 128>}, {transform_indices = @transform_1, window_bounds = array<i64: 128, 128>}, {transform_indices = @transform_2, window_bounds = array<i64: 1, 128>}, {transform_indices = @transform_3, window_bounds = array<i64: 1, 128>}, {transform_indices = @transform_4, window_bounds = array<i64: 1, 128>}, {transform_indices = @transform_5, window_bounds = array<i64: 8, 128>}]} {
    %c0_i32 = arith.constant 0 : i32
    %0 = arith.cmpi eq, %arg1, %c0_i32 : i32
    %1 = arith.extui %0 : i1 to i32
    %c0_i32_0 = arith.constant 0 : i32
    %2 = arith.cmpi ne, %1, %c0_i32_0 : i32
    scf.if %2 {
      %cst_11 = arith.constant 0.000000e+00 : f32
      %13 = vector.broadcast %cst_11 : f32 to vector<8x128xf32>
      %c0_12 = arith.constant 0 : index
      %c0_13 = arith.constant 0 : index
      %14 = vector.load %arg7[%c0_12, %c0_13] : memref<8x128xf32, #tpu.memory_space<vmem>>, vector<8x128xf32>
      tpu.vector_store %arg7[%c0_12, %c0_13], %13 {strides = array<i32>} : memref<8x128xf32, #tpu.memory_space<vmem>>, vector<8x128xf32>,
    } else {
    }
    %c0 = arith.constant 0 : index
    %c0_1 = arith.constant 0 : index
    %c0_2 = arith.constant 0 : index
    %3 = vector.load %arg2[%c0, %c0_1, %c0_2] : memref<1x8x128xbf16, #tpu.memory_space<vmem>>, vector<1x8x128xbf16>
    %4 = vector.shape_cast %3 : vector<1x8x128xbf16> to vector<8x128xbf16>
    %c0_3 = arith.constant 0 : index
    %c0_4 = arith.constant 0 : index
    %5 = vector.load %arg7[%c0_3, %c0_4] : memref<8x128xf32, #tpu.memory_space<vmem>>, vector<8x128xf32>
    %c0_5 = arith.constant 0 : index
    %c0_6 = arith.constant 0 : index
    %6 = vector.load %arg3[%c0_5, %c0_6] : memref<128x128xbf16, #tpu.memory_space<vmem>>, vector<128x128xbf16>
    %cst = arith.constant dense<0.000000e+00> : vector<8x128xf32>
    %7 = tpu.matmul %4, %6, %cst {dimension_numbers = #tpu.dot_dimension_numbers<[1], [0], [0], [1], [0, 0, 1, 1], [], []>} : vector<8x128xbf16>, vector<128x128xbf16>, vector<8x128xf32> -> vector<8x128xf32>
    %8 = arith.addf %5, %7 : vector<8x128xf32>
    %c0_7 = arith.constant 0 : index
    %c0_8 = arith.constant 0 : index
    %9 = vector.load %arg7[%c0_7, %c0_8] : memref<8x128xf32, #tpu.memory_space<vmem>>, vector<8x128xf32>
    tpu.vector_store %arg7[%c0_7, %c0_8], %8 {strides = array<i32>} : memref<8x128xf32, #tpu.memory_space<vmem>>, vector<8x128xf32>,
    %c0_i32_9 = arith.constant 0 : i32
    %10 = arith.cmpi eq, %arg1, %c0_i32_9 : i32
    %11 = arith.extui %10 : i1 to i32
    %c0_i32_10 = arith.constant 0 : i32
    %12 = arith.cmpi ne, %11, %c0_i32_10 : i32
    scf.if %12 {
      %c0_11 = arith.constant 0 : index
      %c0_12 = arith.constant 0 : index
      %13 = vector.load %arg7[%c0_11, %c0_12] : memref<8x128xf32, #tpu.memory_space<vmem>>, vector<8x128xf32>
      %c0_13 = arith.constant 0 : index
      %c0_14 = arith.constant 0 : index
      %14 = vector.load %arg4[%c0_13, %c0_14] : memref<1x128xf32, #tpu.memory_space<vmem>>, vector<1x128xf32>
      %15 = vector.broadcast %14 : vector<1x128xf32> to vector<8x128xf32>
      %16 = arith.addf %13, %15 : vector<8x128xf32>
      %cst_15 = arith.constant dense<0.000000e+00> : vector<128xf32>
      %17 = vector.multi_reduction <add>, %16, %cst_15 [0] : vector<8x128xf32> to vector<128xf32>
      %18 = vector.shape_cast %17 : vector<128xf32> to vector<1x128xf32>
      %cst_16 = arith.constant 1.250000e-01 : f32
      %19 = vector.broadcast %cst_16 : f32 to vector<1x128xf32>
      %20 = arith.mulf %18, %19 : vector<1x128xf32>
      %21 = vector.broadcast %20 : vector<1x128xf32> to vector<8x128xf32>
      %22 = arith.subf %16, %21 : vector<8x128xf32>
      %23 = arith.mulf %22, %22 : vector<8x128xf32>
      %cst_17 = arith.constant dense<0.000000e+00> : vector<128xf32>
      %24 = vector.multi_reduction <add>, %23, %cst_17 [0] : vector<8x128xf32> to vector<128xf32>
      %25 = vector.shape_cast %24 : vector<128xf32> to vector<1x128xf32>
      %cst_18 = arith.constant 1.250000e-01 : f32
      %26 = vector.broadcast %cst_18 : f32 to vector<1x128xf32>
      %27 = arith.mulf %25, %26 : vector<1x128xf32>
      %c0_19 = arith.constant 0 : index
      %c0_20 = arith.constant 0 : index
      %28 = vector.load %arg5[%c0_19, %c0_20] : memref<1x128xf32, #tpu.memory_space<vmem>>, vector<1x128xf32>
      %cst_21 = arith.constant 9.99999974E-6 : f32
      %29 = vector.broadcast %cst_21 : f32 to vector<1x128xf32>
      %30 = arith.addf %27, %29 : vector<1x128xf32>
      %31 = math.rsqrt %30 : vector<1x128xf32>
      %32 = vector.broadcast %31 : vector<1x128xf32> to vector<8x128xf32>
      %33 = arith.mulf %22, %32 : vector<8x128xf32>
      %34 = vector.broadcast %28 : vector<1x128xf32> to vector<8x128xf32>
      %35 = arith.mulf %34, %33 : vector<8x128xf32>
      %c0_22 = arith.constant 0 : index
      %c0_23 = arith.constant 0 : index
      %36 = vector.load %arg6[%c0_22, %c0_23] : memref<1x128xf32, #tpu.memory_space<vmem>>, vector<1x128xf32>
      %37 = vector.broadcast %36 : vector<1x128xf32> to vector<8x128xf32>
      %38 = arith.addf %35, %37 : vector<8x128xf32>
      %cst_24 = arith.constant 0.000000e+00 : f32
      %39 = vector.broadcast %cst_24 : f32 to vector<8x128xf32>
      %40 = arith.maximumf %38, %39 : vector<8x128xf32>
      %c0_25 = arith.constant 0 : index
      %c0_26 = arith.constant 0 : index
      %41 = vector.load %arg7[%c0_25, %c0_26] : memref<8x128xf32, #tpu.memory_space<vmem>>, vector<8x128xf32>
      tpu.vector_store %arg7[%c0_25, %c0_26], %40 {strides = array<i32>} : memref<8x128xf32, #tpu.memory_space<vmem>>, vector<8x128xf32>,
    } else {
    }
    return
  }
  func.func @transform_0(%arg0: i32, %arg1: i32) -> (i32, i32, i32) {
    %c0_i32 = arith.constant 0 : i32
    %c0_i32_0 = arith.constant 0 : i32
    %c0_i32_1 = arith.constant 0 : i32
    return %arg1, %c0_i32, %c0_i32_0 : i32, i32, i32
  }
  func.func @transform_1(%arg0: i32, %arg1: i32) -> (i32, i32) {
    %c0_i32 = arith.constant 0 : i32
    return %arg1, %arg0 : i32, i32
  }
  func.func @transform_2(%arg0: i32, %arg1: i32) -> (i32, i32) {
    %c0_i32 = arith.constant 0 : i32
    %c0_i32_0 = arith.constant 0 : i32
    return %c0_i32, %arg0 : i32, i32
  }
  func.func @transform_3(%arg0: i32, %arg1: i32) -> (i32, i32) {
    %c0_i32 = arith.constant 0 : i32
    %c0_i32_0 = arith.constant 0 : i32
    return %c0_i32, %arg0 : i32, i32
  }
  func.func @transform_4(%arg0: i32, %arg1: i32) -> (i32, i32) {
    %c0_i32 = arith.constant 0 : i32
    %c0_i32_0 = arith.constant 0 : i32
    return %c0_i32, %arg0 : i32, i32
  }
  func.func @transform_5(%arg0: i32, %arg1: i32) -> (i32, i32) {
    %c0_i32 = arith.constant 0 : i32
    %c0_i32_0 = arith.constant 0 : i32
    return %c0_i32, %arg0 : i32, i32
  }
}

</mosaic_0001>

<bundles_post_ra>
// kernel: fully_connected_forward.1
= control target key start
LH: loop header
LB: loop body
LE: loop exit
PB: predicated region body
PF: predicated region fallthrough
CT: control target
= control target key end

     0   :  { %v275_v1 = vmov 0.0   ;;  %vm276_vm0 = vmmov 0   ;;  %s356_s0 = inlined_call_operand.vmem [shape: bf16[1,8,128], index: 0, kind: input, shape index: {}]   ;;  %s357_s1 = inlined_call_operand.vmem [shape: bf16[128,128], index: 1, kind: input, shape index: {}]   ;;  %s358_s2 = inlined_call_operand.vmem [shape: f32[1,128], index: 2, kind: input, shape index: {}]   ;;  %s359_s3 = inlined_call_operand.vmem [shape: f32[1,128], index: 3, kind: input, shape index: {}]   ;;  %s360_s4 = inlined_call_operand.vmem [shape: f32[1,128], index: 4, kind: input, shape index: {}]   ;;  %s361_s5 = inlined_call_operand.hbm [shape: f32[8,128], index: 5, kind: output, shape index: {}]  }
   0x1   :  { %v241_v0 = vld [vmem:[%s357_s1] sm:$0xff]   ;;  %218 = vmatprep.subr.bf16.mxu0 %v275_v1  ;;  %v242_v2 = vld [vmem:[%s357_s1 + $0x8] sm:$0xff]   ;;  %234 = vmatprep.mubr.msk.bf16.mxu0 %vm276_vm0, %v275_v1  ;;  %v243_v3 = vld [vmem:[%s357_s1 + $0x10] sm:$0xff]  }
   0x2   :  { %219 = vmatpush3.bf16.msra.mxu0 %v241_v0 }
   0x3   :  { %220 = vmatprep.subr.bf16.mxu0 %v275_v1 }
   0x6   :  { %221 = vmatpush3.bf16.msra.mxu0 %v242_v2 }
   0x7   :  { %222 = vmatprep.subr.bf16.mxu0 %v275_v1 }
   0x8   :  { %10 = vsyncpa [#allocation3], 0  ;;  %v244_v4 = vld [vmem:[%s357_s1 + $0x18] sm:$0xff]   ;;  %v245_v5 = vld [vmem:[%s357_s1 + $0x20] sm:$0xff]   ;;  %s277_s14 = smov [#allocation2]  }
   0x9   :  { %v246_v6 = vld [vmem:[%s357_s1 + $0x28] sm:$0xff]   ;;  %v247_v7 = vld [vmem:[%s357_s1 + $0x30] sm:$0xff]   ;;  %v248_v8 = vld [vmem:[%s357_s1 + $0x38] sm:$0xff]   ;;  %s190_s15 = sshll.u32 %s277_s14, 4  ;;  %s191_s15 = int_to_ptr.vmem [resolvable:$true] %s190_s15 }
   0xa   :  { %223 = vmatpush3.bf16.msra.mxu0 %v243_v3  ;;  %v27_v9 = vld [vmem:[%s356_s0] sm:$0xf]  ;;  %s251_s16 = scalar_lea.vmem %s191_s15, 128  ;;  %p256_p1 = scmp.lt.s32.totalorder %s191_s15, %s191_s15 }
   0xb   :  { %224 = vmatprep.subr.bf16.mxu0 %v275_v1  ;;  %v206_v11 = vld [vmem:[%s358_s2] ss:$0 sm:$0xff]  ;;  %p252_p0 = scmp.ne.s32.totalorder %s191_s15, %s251_s16  ;;  %p257_p2 = scmp.lt.s32.totalorder %s251_s16, %s251_s16 }
   0xc   :  { %v207_v34 = vld [vmem:[%s359_s3] ss:$0 sm:$0xff] }
   0xd   :  { %v208_v36 = vld [vmem:[%s360_s4] ss:$0 sm:$0xff]  ;;  %p258_p3 = por %p257_p2, %p256_p1 }
   0xe   :  { %225 = vmatpush3.bf16.msra.mxu0 %v244_v4 }
   0xf   :  { %226 = vmatprep.subr.bf16.mxu0 %v275_v1  ;;  %p259_p4 = pnand %p258_p3, %p252_p0 }
  0x12   :  { %227 = vmatpush3.bf16.msra.mxu0 %v245_v5 }
  0x13   :  { %228 = vmatprep.subr.bf16.mxu0 %v275_v1 }
  0x16   :  { %229 = vmatpush3.bf16.msra.mxu0 %v246_v6 }
  0x17   :  { %230 = vmatprep.subr.bf16.mxu0 %v275_v1 }
  0x1a   :  { %231 = vmatpush3.bf16.msra.mxu0 %v247_v7 }
  0x1b   :  { %232 = vmatprep.subr.bf16.mxu0 %v275_v1 }
  0x1e   :  { %233 = vmatpush3.bf16.msra.mxu0 %v248_v8 }
  0x21   :  { %235 = vmatmul.mubr.bf16.vlgmr.msra.gmra.mrb[0].mxu0 %v27_v9 }
  0xf4   :  { %v127_v10 = vpop.f32.mrb[0].mxu0 }
  0xf5   :  { %v236_v12 = vpop.f32.mrb[1].mxu0  ;;  %v146_v15 = vadd.f32 %v206_v11, %v127_v10 }
  0xf6   :  { %v130_v13 = vpop.f32.mrb[2].mxu0 }
  0xf7   :  { %v237_v14 = vpop.f32.mrb[3].mxu0  ;;  %v147_v16 = vrot.slane %v146_v15, 4 }
  0xf9   :  { %v148_v17 = vadd.f32 %v147_v16, %v146_v15 }
  0xfb   :  { %v149_v18 = vrot.slane %v148_v17, 2 }
  0xfd   :  { %v150_v19 = vadd.f32 %v149_v18, %v148_v17 }
  0xff   :  { %v151_v20 = vrot.slane %v150_v19, 1 }
 0x101   :  { %v152_v21 = vadd.f32 %v151_v20, %v150_v19 }
 0x103   :  { %v153_v22 = vmul.f32 0.125, %v152_v21 }
 0x105   :  { %v154_v23 = vsub.f32 %v146_v15, %v153_v22 }
 0x107   :  { %v155_v24 = vmul.f32 %v154_v23, %v154_v23 }
 0x109   :  { %v156_v25 = vrot.slane %v155_v24, 4 }
 0x10b   :  { %v157_v26 = vadd.f32 %v156_v25, %v155_v24 }
 0x10d   :  { %v158_v27 = vrot.slane %v157_v26, 2 }
 0x10f   :  { %v159_v28 = vadd.f32 %v158_v27, %v157_v26 }
 0x111   :  { %v160_v29 = vrot.slane %v159_v28, 1 }
 0x113   :  { %v161_v30 = vadd.f32 %v160_v29, %v159_v28 }
 0x115   :  { %v162_v31 = vmul.f32 0.125, %v161_v30 }
 0x117   :  { %v164_v32 = vadd.f32 1e-05, %v162_v31 }
 0x119   :  { %249 = vrsqrt.f32 %v164_v32 }
 0x123   :  { %v250_v33 = vpop.eup %249 }
 0x124   :  { %v166_v35 = vmul.f32 %v250_v33, %v154_v23 }
 0x126   :  { %v173_v37 = vmul.f32 %v207_v34, %v166_v35 }
 0x128   :  { %v181_v38 = vadd.f32 %v208_v36, %v173_v37 }
 0x12a   :  { %v182_v39 = vmax.f32 %v181_v38, 0.0 }
 0x12c   :  { %183 = vst [vmem:[#allocation2] sm:$0xff] %v182_v39 }
 0x12d   :  { %262 = shalt.err (!%p259_p4)
}
 0x12e   :  { %s263_s18 = scalar_lea.hbm %s361_s5, 128 }
 0x12f   :  { %p264_p5 = scmp.ne.s32.totalorder %s361_s5, %s263_s18  ;;  %p267_p6 = scmp.lt.u32.totalorder %s263_s18, %s361_s5 }
 0x131   :  { %p269_p7 = pnand %p267_p6, %p264_p5 }
 0x133   :  { %272 = shalt.err (!%p269_p7)
}
 0x134   :  { %193 = dma.vmem_to_hbm [thread:$0]  %s191_s15, 128, %s361_s5, [#allocation3]  }
 0x135   :  { %273 = dma.done.wait [#allocation3], 128  }
 0x136   :  { %274 = vsyncadd [#allocation3], 4294967168 }
 0x137   :  { %197 = vsyncpa [#allocation3], 1 }

</bundles_post_ra>
